<compile_context>
chip_gen: v7x
topology: tpu7x:2x2x1
jax: 0.10.0
libtpu: 0.0.40
codegen_flags: <defaults>
</compile_context>

<pallas_src>
import numpy as np
import jax
import jax.numpy as jnp
from jax import lax
from jax.experimental import pallas as pl
from jax.experimental.pallas import tpu as pltpu

GN_EPS = 1e-5


# ----------------------------------------------------------------------------
# Kernel factory
# ----------------------------------------------------------------------------
def _make_frcm_kernel(n_sides, bb, cout, hwo, groups):
    """groups: list of {"identity": bool, "k": Hi*Wi}, one per unique spatial size."""
    n_rt = sum(1 for g in groups if not g["identity"])

    def kernel(gid_ref, x_ref, wt_ref, p_ref, wf_ref, pf_ref, *rest):
        # gid_ref : (n_sides,) int32 in SMEM (scalar prefetch): side -> spatial group
        # x_ref   : (1, BB, Cin_max, HWi_max)  zero-padded input, channel-major
        # wt_ref  : (1, Cout, Cin_max)         zero-padded 1x1-conv weight
        # p_ref   : (1, Cout, 4)               [bias, prelu_a, gn_w, gn_b]
        # wf_ref  : (1, Cout, Cout)            per-side block of the fused conv weight
        # pf_ref  : (Cout, 2)                  [fused_bias, prelu_a]
        # rest    : n_rt resize matrices [K_g, HWo], then o_side, o_fused, z scratch
        rt_refs = rest[:n_rt]
        o_side_ref = rest[n_rt]        # (1, BB*Cout, HWo)
        o_fused_ref = rest[n_rt + 1]   # (BB*Cout, HWo), resident across side axis
        z_ref = rest[n_rt + 2]         # VMEM scratch (BB*Cout, HWo) f32

        s = pl.program_id(1)

        wt = wt_ref[0]                       # [Cout, Cin_max]
        p = p_ref[0]                         # [Cout, 4]
        wf = wf_ref[0]                       # [Cout, Cout]
        bias, alpha = p[:, 0:1], p[:, 1:2]
        gw, gb = p[:, 2:3], p[:, 3:4]

        # --- 1x1 conv == channel matmul (MXU), batch stacked along sublanes ---
        ys = [jnp.dot(wt, x_ref[0, b], preferred_element_type=jnp.float32)
              for b in range(bb)]
        y = ys[0] if bb == 1 else jnp.concatenate(ys, axis=0)    # [BB*Cout, HWi_max]

        # --- bilinear resize (align_corners): one branch per spatial group -------
        gid = gid_ref[s]
        rt_i = 0
        for g, info in enumerate(groups):
            if info["identity"]:
                def _branch(y=y):
                    z_ref[...] = y[:, :hwo]            # same-size resize == identity
            else:
                rt_ref = rt_refs[rt_i]
                rt_i += 1
                k = info["k"]
                def _branch(y=y, rt_ref=rt_ref, k=k):
                    z_ref[...] = jnp.dot(y[:, :k], rt_ref[...],
                                         preferred_element_type=jnp.float32)
            pl.when(gid == g)(_branch)

        z = z_ref[...]                                            # [BB*Cout, HWo]

        # --- bias + PReLU + GroupNorm(1, C) per batch row-group + fused-head dot --
        inv_n = 1.0 / (cout * hwo)
        normed = []
        contribs = []
        for b in range(bb):
            zb = z[b * cout:(b + 1) * cout, :] + bias
            zb = jnp.where(zb > 0, zb, alpha * zb)                # PReLU
            mu = jnp.sum(zb) * inv_n                              # GroupNorm(1, C)
            var = jnp.maximum(jnp.sum(zb * zb) * inv_n - mu * mu, 0.0)
            scale = gw * lax.rsqrt(var + GN_EPS)                  # [Cout, 1]
            shift = gb - mu * scale
            zb_n = zb * scale + shift
            normed.append(zb_n)
            contribs.append(jnp.dot(wf, zb_n, preferred_element_type=jnp.float32))

        z_n = normed[0] if bb == 1 else jnp.concatenate(normed, axis=0)
        o_side_ref[0] = z_n.astype(o_side_ref.dtype)              # aligned (8,256) store

        contrib = contribs[0] if bb == 1 else jnp.concatenate(contribs, axis=0)

        @pl.when(s == 0)
        def _():
            o_fused_ref[...] = contrib

        @pl.when(s > 0)
        def _():
            o_fused_ref[...] += contrib

        @pl.when(s == n_sides - 1)
        def _():
            bias_f = pf_ref[:, 0:1]
            alpha_f = pf_ref[:, 1:2]
            if bb > 1:
                bias_f = jnp.concatenate([bias_f] * bb, axis=0)
                alpha_f = jnp.concatenate([alpha_f] * bb, axis=0)
            f = o_fused_ref[...] + bias_f
            o_fused_ref[...] = jnp.where(f > 0, f, alpha_f * f)

    return kernel


# ----------------------------------------------------------------------------
# pallas_call wrapper
# ----------------------------------------------------------------------------
def _pick_batch_block(batch, cout):
    bb = 1
    for cand in range(1, batch + 1):
        if batch % cand == 0 and cand * cout <= 128:   # keep MXU LHS rows <= 128
            bb = cand
    return bb


def frcm_pallas_call(packed, x_slab):
    n = packed["n_sides"]
    cout = packed["Cout"]
    cin_max = packed["Cin_max"]
    hwi_max = packed["HWi_max"]
    hwo = packed["HWo"]
    groups = packed["groups"]
    rt_list = packed["rt_list"]
    B = x_slab.shape[1]

    bb = _pick_batch_block(B, cout)
    n_bblk = B // bb

    kernel = _make_frcm_kernel(n, bb, cout, hwo, groups)

    in_specs = [
        pl.BlockSpec((1, bb, cin_max, hwi_max), lambda i, s, g: (s, i, 0, 0)),
        pl.BlockSpec((1, cout, cin_max),        lambda i, s, g: (s, 0, 0)),
        pl.BlockSpec((1, cout, 4),              lambda i, s, g: (s, 0, 0)),
        pl.BlockSpec((1, cout, cout),           lambda i, s, g: (s, 0, 0)),
        pl.BlockSpec((cout, 2),                 lambda i, s, g: (0, 0)),
    ]
    for rt in rt_list:   # per-group resize matrices: fetched once, stay resident
        in_specs.append(pl.BlockSpec(rt.shape, lambda i, s, g: (0, 0)))

    out_shape = (jax.ShapeDtypeStruct((n, B * cout, hwo), jnp.float32),
                 jax.ShapeDtypeStruct((B * cout, hwo), jnp.float32))
    out_specs = (pl.BlockSpec((1, bb * cout, hwo), lambda i, s, g: (s, i, 0)),
                 pl.BlockSpec((bb * cout, hwo),    lambda i, s, g: (i, 0)))

    gid_np = np.asarray(packed["group_ids"])
    flops = 0
    for s in range(n):
        k = 0 if groups[gid_np[s]]["identity"] else groups[gid_np[s]]["k"]
        flops += 2 * B * cout * cin_max * hwi_max      # 1x1 conv
        flops += 2 * B * cout * k * hwo                # resize
        flops += 2 * B * cout * cout * hwo             # fused-head accumulate
    bytes_acc = 4 * (x_slab.size + packed["wt_slab"].size + packed["p_slab"].size
                     + packed["wf_slab"].size + packed["pf"].size
                     + sum(int(r.size) for r in rt_list)
                     + n * B * cout * hwo + B * cout * hwo)

    side_slab, fused = pl.pallas_call(
        kernel,
        out_shape=out_shape,
        grid_spec=pltpu.PrefetchScalarGridSpec(
            num_scalar_prefetch=1,
            grid=(n_bblk, n),                 # side axis innermost (accumulator)
            in_specs=in_specs,
            out_specs=out_specs,
            scratch_shapes=[pltpu.VMEM((bb * cout, hwo), jnp.float32)]),
        compiler_params=pltpu.CompilerParams(
            dimension_semantics=("parallel", "arbitrary")),
        cost_estimate=pl.CostEstimate(flops=int(flops),
                                      transcendentals=int(n * B),
                                      bytes_accessed=int(bytes_acc)),
    )(jnp.asarray(packed["group_ids"], jnp.int32), x_slab,
      packed["wt_slab"], packed["p_slab"], packed["wf_slab"], packed["pf"],
      *rt_list)
    return side_slab, fused


# ----------------------------------------------------------------------------
# Glue: bilinear resize matrix (align_corners=True), parameters, packing
# ----------------------------------------------------------------------------
def _resize_matrix_align_corners(out_size, in_size):
    R = np.zeros((out_size, in_size), dtype=np.float32)
    if in_size == 1:
        R[:, 0] = 1.0
        return R
    if out_size == 1:
        R[0, 0] = 1.0  # PyTorch: scale=0 when out_size==1 -> src=0 (unreachable here)
        return R
    scale = (in_size - 1) / (out_size - 1)
    for j in range(out_size):
        src = j * scale
        i0 = min(int(np.floor(src)), in_size - 1)
        i1 = min(i0 + 1, in_size - 1)
        frac = src - i0
        R[j, i0] += 1.0 - frac
        R[j, i1] += frac
    return R


def make_frcm_params(key, ch_ins, ch_out):
    """Raw parameters, matching the PyTorch module's init (channel-major weights)."""
    n = len(ch_ins)
    keys = jax.random.split(key, n + 1)
    return {
        "red_w": [jax.random.normal(keys[i], (ch_out, ch_ins[i]), jnp.float32) * 0.01
                  for i in range(n)],                                  # [Cout, Cin_i]
        "red_b": [jnp.zeros((ch_out,), jnp.float32) for _ in range(n)],
        "fused_w": jax.random.normal(keys[-1], (ch_out, ch_out * n), jnp.float32) * 0.01,
        "fused_b": jnp.zeros((ch_out,), jnp.float32),
        "prelu_a": jnp.full((ch_out,), 0.1, jnp.float32),   # shared PReLU (as in module)
        "gn_w": jnp.ones((ch_out,), jnp.float32),
        "gn_b": jnp.zeros((ch_out,), jnp.float32),
    }


def pack_frcm_params(params, ch_ins, spatials, img_shape):
    """One-time packing: padded per-side slabs + per-spatial-group resize matrices."""
    H, W = img_shape
    hwo = H * W
    n = len(ch_ins)
    cout = int(params["prelu_a"].shape[0])
    cin_max = max(ch_ins)
    hwi_max = max(h * w for (h, w) in spatials)

    # group sides by unique spatial size (resize matrix depends only on it)
    uniq = []
    gid = np.zeros((n,), np.int32)
    for i, hw in enumerate(spatials):
        if hw not in uniq:
            uniq.append(hw)
        gid[i] = uniq.index(hw)

    groups = []
    rt_list = []
    for (Hi, Wi) in uniq:
        ident = (Hi == H) and (Wi == W)
        groups.append({"identity": ident, "k": Hi * Wi})
        if not ident:
            R = np.kron(_resize_matrix_align_corners(H, Hi),
                        _resize_matrix_align_corners(W, Wi))          # [HWo, Hi*Wi]
            rt_list.append(jnp.asarray(R.T.astype(np.float32)))       # [Hi*Wi, HWo]

    wt = np.zeros((n, cout, cin_max), np.float32)
    p = np.zeros((n, cout, 4), np.float32)
    for i in range(n):
        wt[i, :, :ch_ins[i]] = np.asarray(params["red_w"][i])
        p[i, :, 0] = np.asarray(params["red_b"][i])
        p[i, :, 1] = np.asarray(params["prelu_a"])
        p[i, :, 2] = np.asarray(params["gn_w"])
        p[i, :, 3] = np.asarray(params["gn_b"])

    # fused weight [Cout, n*Cout] -> per-side blocks [n, Cout_out, Cout_in]
    wf = np.asarray(params["fused_w"]).reshape(cout, n, cout).transpose(1, 0, 2)
    pf = np.zeros((cout, 2), np.float32)
    pf[:, 0] = np.asarray(params["fused_b"])
    pf[:, 1] = np.asarray(params["prelu_a"])

    return {
        "wt_slab": jnp.asarray(wt), "p_slab": jnp.asarray(p),
        "wf_slab": jnp.asarray(wf), "pf": jnp.asarray(pf),
        "group_ids": gid, "groups": groups, "rt_list": rt_list,
        "Cin_max": cin_max, "HWi_max": hwi_max, "HWo": hwo,
        "Cout": cout, "n_sides": n,
    }


def frcm_forward(packed, img_shape, sides_nchw):
    """Returns 12 NCHW tensors: 11 late sides + fused, like the PyTorch module."""
    H, W = img_shape
    n = packed["n_sides"]
    cout = packed["Cout"]
    cin_max = packed["Cin_max"]
    hwi_max = packed["HWi_max"]
    B = sides_nchw[0].shape[0]

    # Pack inputs: flatten NCHW -> [B, Cin, Hi*Wi] (free), zero-pad, stack over sides.
    xs = []
    for x in sides_nchw:
        _, cin, Hi, Wi = x.shape
        xf = x.reshape(B, cin, Hi * Wi)
        xf = jnp.pad(xf, ((0, 0), (0, cin_max - cin), (0, hwi_max - Hi * Wi)))
        xs.append(xf)
    x_slab = jnp.stack(xs, axis=0)                       # [n, B, Cin_max, HWi_max]

    side_slab, fused = frcm_pallas_call(packed, x_slab)  # [n, B*Cout, HWo], [B*Cout, HWo]

    outs = [side_slab[s].reshape(B, cout, H, W) for s in range(n)]
    outs.append(fused.reshape(B, cout, H, W))
    return outs


# ----------------------------------------------------------------------------
# Pure-JAX reference (same math, no Pallas) for a sanity check
# ----------------------------------------------------------------------------
def frcm_reference(params, img_shape, sides_nchw):
    H, W = img_shape
    a = params["prelu_a"][:, None]
    gw = params["gn_w"][:, None]
    gb = params["gn_b"][:, None]
    late = []
    B = sides_nchw[0].shape[0]
    for i, x in enumerate(sides_nchw):
        _, Cin, Hi, Wi = x.shape
        xf = x.reshape(B, Cin, Hi * Wi)
        y = jnp.einsum("oc,bcp->bop", params["red_w"][i], xf) + params["red_b"][i][:, None]
        R = jnp.asarray(np.kron(_resize_matrix_align_corners(H, Hi),
                                _resize_matrix_align_corners(W, Wi)))
        z = jnp.einsum("bop,qp->boq", y, R)
        z = jnp.where(z > 0, z, a * z)
        mu = jnp.mean(z, axis=(1, 2), keepdims=True)
        var = jnp.mean((z - mu) ** 2, axis=(1, 2), keepdims=True)
        z = (z - mu) * lax.rsqrt(var + GN_EPS) * gw + gb
        late.append(z)
    cat = jnp.concatenate(late, axis=1)                  # [B, n*Cout, HWo]
    f = jnp.einsum("oc,bcq->boq", params["fused_w"], cat) + params["fused_b"][:, None]
    f = jnp.where(f > 0, f, a * f)
    late.append(f)
    return [t.reshape(B, -1, H, W) for t in late]


# ----------------------------------------------------------------------------
if __name__ == "__main__":
    key = jax.random.PRNGKey(0)
    k_par, k_in = jax.random.split(key)

    ch_out = 4
    ch_ins = [3, 4, 6, 8, 4, 6, 3, 8, 4, 6, 8]           # 11 sides
    spatials = [16, 8, 8, 4, 4, 8, 16, 4, 16, 8, 4]      # per-side H_i == W_i
    B = 2
    img_shape = (16, 16)

    params = make_frcm_params(k_par, ch_ins, ch_out)
    packed = pack_frcm_params(params, ch_ins, [(s, s) for s in spatials], img_shape)

    in_keys = jax.random.split(k_in, len(ch_ins))
    sides = [jax.random.normal(in_keys[i], (B, ch_ins[i], spatials[i], spatials[i]),
                               jnp.float32)
             for i in range(len(ch_ins))]

    outs = frcm_forward(packed, img_shape, sides)
    outs = [jax.block_until_ready(o) for o in outs]

    # sanity check against the pure-JAX reference
    refs = frcm_reference(params, img_shape, sides)
    for o, r in zip(outs, refs):
        assert o.shape == (B, ch_out, *img_shape)
        np.testing.assert_allclose(np.asarray(o), np.asarray(r), rtol=1e-2, atol=1e-2)

    print("KERNEL_OK")
</pallas_src>

<mosaic_0001>
module attributes {stable_mosaic.version = 11 : i64} {
  func.func @kernel(%arg0: i32, %arg1: i32, %arg2: memref<11xi32, #tpu.memory_space<smem>>, %arg3: memref<1x2x8x256xf32, #tpu.memory_space<vmem>>, %arg4: memref<1x4x8xf32, #tpu.memory_space<vmem>>, %arg5: memref<1x4x4xf32, #tpu.memory_space<vmem>>, %arg6: memref<1x4x4xf32, #tpu.memory_space<vmem>>, %arg7: memref<4x2xf32, #tpu.memory_space<vmem>>, %arg8: memref<64x256xf32, #tpu.memory_space<vmem>>, %arg9: memref<16x256xf32, #tpu.memory_space<vmem>>, %arg10: memref<1x8x256xf32, #tpu.memory_space<vmem>>, %arg11: memref<8x256xf32, #tpu.memory_space<vmem>>, %arg12: memref<8x256xf32, #tpu.memory_space<vmem>>) attributes {dimension_semantics = [#tpu.dimension_semantics<parallel>, #tpu.dimension_semantics<arbitrary>], iteration_bounds = array<i64: 1, 11>, scalar_prefetch = 1 : i64, scratch_operands = 1 : i64, tpu.core_type = #tpu.core_type<tc>, window_params = [{transform_indices = @transform_0, window_bounds = array<i64: 1, 2, 8, 256>}, {transform_indices = @transform_1, window_bounds = array<i64: 1, 4, 8>}, {transform_indices = @transform_2, window_bounds = array<i64: 1, 4, 4>}, {transform_indices = @transform_3, window_bounds = array<i64: 1, 4, 4>}, {pipeline_mode = #tpu.pipeline_mode<synchronous>, transform_indices = @transform_4, window_bounds = array<i64: 4, 2>}, {pipeline_mode = #tpu.pipeline_mode<synchronous>, transform_indices = @transform_5, window_bounds = array<i64: 64, 256>}, {pipeline_mode = #tpu.pipeline_mode<synchronous>, transform_indices = @transform_6, window_bounds = array<i64: 16, 256>}, {transform_indices = @transform_7, window_bounds = array<i64: 1, 8, 256>}, {transform_indices = @transform_8, window_bounds = array<i64: 8, 256>}]} {
    %c0 = arith.constant 0 : index
    %c0_0 = arith.constant 0 : index
    %c0_1 = arith.constant 0 : index
    %0 = vector.load %arg4[%c0, %c0_0, %c0_1] : memref<1x4x8xf32, #tpu.memory_space<vmem>>, vector<1x4x8xf32>
    %1 = vector.shape_cast %0 : vector<1x4x8xf32> to vector<4x8xf32>
    %c0_2 = arith.constant 0 : index
    %c0_3 = arith.constant 0 : index
    %c0_4 = arith.constant 0 : index
    %2 = vector.load %arg5[%c0_2, %c0_3, %c0_4] : memref<1x4x4xf32, #tpu.memory_space<vmem>>, vector<1x4x4xf32>
    %3 = vector.shape_cast %2 : vector<1x4x4xf32> to vector<4x4xf32>
    %c0_5 = arith.constant 0 : index
    %c0_6 = arith.constant 0 : index
    %c0_7 = arith.constant 0 : index
    %4 = vector.load %arg6[%c0_5, %c0_6, %c0_7] : memref<1x4x4xf32, #tpu.memory_space<vmem>>, vector<1x4x4xf32>
    %5 = vector.shape_cast %4 : vector<1x4x4xf32> to vector<4x4xf32>
    %6 = vector.extract_strided_slice %3 {offsets = [0, 0], sizes = [4, 1], strides = [1, 1]} : vector<4x4xf32> to vector<4x1xf32>
    %7 = vector.extract_strided_slice %3 {offsets = [0, 1], sizes = [4, 1], strides = [1, 1]} : vector<4x4xf32> to vector<4x1xf32>
    %8 = vector.extract_strided_slice %3 {offsets = [0, 2], sizes = [4, 1], strides = [1, 1]} : vector<4x4xf32> to vector<4x1xf32>
    %9 = vector.extract_strided_slice %3 {offsets = [0, 3], sizes = [4, 1], strides = [1, 1]} : vector<4x4xf32> to vector<4x1xf32>
    %c0_8 = arith.constant 0 : index
    %c0_9 = arith.constant 0 : index
    %c0_10 = arith.constant 0 : index
    %c0_11 = arith.constant 0 : index
    %10 = vector.load %arg3[%c0_8, %c0_9, %c0_10, %c0_11] : memref<1x2x8x256xf32, #tpu.memory_space<vmem>>, vector<1x1x8x256xf32>
    %11 = vector.shape_cast %10 : vector<1x1x8x256xf32> to vector<8x256xf32>
    %cst = arith.constant dense<0.000000e+00> : vector<4x256xf32>
    %12 = tpu.matmul %1, %11, %cst {dimension_numbers = #tpu.dot_dimension_numbers<[1], [0], [0], [1], [0, 0, 1, 1], [], []>} : vector<4x8xf32>, vector<8x256xf32>, vector<4x256xf32> -> vector<4x256xf32>
    %c0_12 = arith.constant 0 : index
    %c1 = arith.constant 1 : index
    %c0_13 = arith.constant 0 : index
    %c0_14 = arith.constant 0 : index
    %13 = vector.load %arg3[%c0_12, %c1, %c0_13, %c0_14] : memref<1x2x8x256xf32, #tpu.memory_space<vmem>>, vector<1x1x8x256xf32>
    %14 = vector.shape_cast %13 : vector<1x1x8x256xf32> to vector<8x256xf32>
    %cst_15 = arith.constant dense<0.000000e+00> : vector<4x256xf32>
    %15 = tpu.matmul %1, %14, %cst_15 {dimension_numbers = #tpu.dot_dimension_numbers<[1], [0], [0], [1], [0, 0, 1, 1], [], []>} : vector<4x8xf32>, vector<8x256xf32>, vector<4x256xf32> -> vector<4x256xf32>
    %16 = tpu.concatenate %12, %15 in 0 : vector<4x256xf32>, vector<4x256xf32> -> vector<8x256xf32>
    %17 = arith.index_cast %arg1 : i32 to index
    %18 = memref.load %arg2[%17] : memref<11xi32, #tpu.memory_space<smem>>
    %c0_i32 = arith.constant 0 : i32
    %19 = arith.cmpi eq, %18, %c0_i32 : i32
    %20 = arith.extui %19 : i1 to i32
    %c0_i32_16 = arith.constant 0 : i32
    %21 = arith.cmpi ne, %20, %c0_i32_16 : i32
    scf.if %21 {
      %c0_45 = arith.constant 0 : index
      %c0_46 = arith.constant 0 : index
      %111 = vector.load %arg12[%c0_45, %c0_46] : memref<8x256xf32, #tpu.memory_space<vmem>>, vector<8x256xf32>
      tpu.vector_store %arg12[%c0_45, %c0_46], %16 {strides = array<i32>} : memref<8x256xf32, #tpu.memory_space<vmem>>, vector<8x256xf32>,
    } else {
    }
    %c1_i32 = arith.constant 1 : i32
    %22 = arith.cmpi eq, %18, %c1_i32 : i32
    %23 = arith.extui %22 : i1 to i32
    %c0_i32_17 = arith.constant 0 : i32
    %24 = arith.cmpi ne, %23, %c0_i32_17 : i32
    scf.if %24 {
      %111 = vector.extract_strided_slice %16 {offsets = [0, 0], sizes = [8, 64], strides = [1, 1]} : vector<8x256xf32> to vector<8x64xf32>
      %c0_45 = arith.constant 0 : index
      %c0_46 = arith.constant 0 : index
      %112 = vector.load %arg8[%c0_45, %c0_46] : memref<64x256xf32, #tpu.memory_space<vmem>>, vector<64x256xf32>
      %cst_47 = arith.constant dense<0.000000e+00> : vector<8x256xf32>
      %113 = tpu.matmul %111, %112, %cst_47 {dimension_numbers = #tpu.dot_dimension_numbers<[1], [0], [0], [1], [0, 0, 1, 1], [], []>} : vector<8x64xf32>, vector<64x256xf32>, vector<8x256xf32> -> vector<8x256xf32>
      %c0_48 = arith.constant 0 : index
      %c0_49 = arith.constant 0 : index
      %114 = vector.load %arg12[%c0_48, %c0_49] : memref<8x256xf32, #tpu.memory_space<vmem>>, vector<8x256xf32>
      tpu.vector_store %arg12[%c0_48, %c0_49], %113 {strides = array<i32>} : memref<8x256xf32, #tpu.memory_space<vmem>>, vector<8x256xf32>,
    } else {
    }
    %c2_i32 = arith.constant 2 : i32
    %25 = arith.cmpi eq, %18, %c2_i32 : i32
    %26 = arith.extui %25 : i1 to i32
    %c0_i32_18 = arith.constant 0 : i32
    %27 = arith.cmpi ne, %26, %c0_i32_18 : i32
    scf.if %27 {
      %111 = vector.extract_strided_slice %16 {offsets = [0, 0], sizes = [8, 16], strides = [1, 1]} : vector<8x256xf32> to vector<8x16xf32>
      %c0_45 = arith.constant 0 : index
      %c0_46 = arith.constant 0 : index
      %112 = vector.load %arg9[%c0_45, %c0_46] : memref<16x256xf32, #tpu.memory_space<vmem>>, vector<16x256xf32>
      %cst_47 = arith.constant dense<0.000000e+00> : vector<8x256xf32>
      %113 = tpu.matmul %111, %112, %cst_47 {dimension_numbers = #tpu.dot_dimension_numbers<[1], [0], [0], [1], [0, 0, 1, 1], [], []>} : vector<8x16xf32>, vector<16x256xf32>, vector<8x256xf32> -> vector<8x256xf32>
      %c0_48 = arith.constant 0 : index
      %c0_49 = arith.constant 0 : index
      %114 = vector.load %arg12[%c0_48, %c0_49] : memref<8x256xf32, #tpu.memory_space<vmem>>, vector<8x256xf32>
      tpu.vector_store %arg12[%c0_48, %c0_49], %113 {strides = array<i32>} : memref<8x256xf32, #tpu.memory_space<vmem>>, vector<8x256xf32>,
    } else {
    }
    %c0_19 = arith.constant 0 : index
    %c0_20 = arith.constant 0 : index
    %28 = vector.load %arg12[%c0_19, %c0_20] : memref<8x256xf32, #tpu.memory_space<vmem>>, vector<8x256xf32>
    %29 = vector.extract_strided_slice %28 {offsets = [0, 0], sizes = [4, 256], strides = [1, 1]} : vector<8x256xf32> to vector<4x256xf32>
    %30 = vector.broadcast %6 : vector<4x1xf32> to vector<4x256xf32>
    %31 = arith.addf %29, %30 : vector<4x256xf32>
    %cst_21 = arith.constant 0.000000e+00 : f32
    %32 = vector.broadcast %cst_21 : f32 to vector<4x256xf32>
    %33 = arith.cmpf ogt, %31, %32 : vector<4x256xf32>
    %34 = vector.broadcast %7 : vector<4x1xf32> to vector<4x256xf32>
    %35 = arith.mulf %34, %31 : vector<4x256xf32>
    %36 = arith.select %33, %31, %35 : vector<4x256xi1>, vector<4x256xf32>
    %37 = vector.shape_cast %36 : vector<4x256xf32> to vector<1x4x256xf32>
    %cst_22 = arith.constant dense<0.000000e+00> : vector<1xf32>
    %38 = vector.multi_reduction <add>, %37, %cst_22 [1, 2] : vector<1x4x256xf32> to vector<1xf32>
    %39 = vector.shape_cast %38 : vector<1xf32> to vector<1x1x1xf32>
    %40 = vector.extract %39[0, 0, 0] : f32 from vector<1x1x1xf32>
    %cst_23 = arith.constant 9.765625E-4 : f32
    %41 = arith.mulf %40, %cst_23 : f32
    %42 = arith.mulf %36, %36 : vector<4x256xf32>
    %43 = vector.shape_cast %42 : vector<4x256xf32> to vector<1x4x256xf32>
    %cst_24 = arith.constant dense<0.000000e+00> : vector<1xf32>
    %44 = vector.multi_reduction <add>, %43, %cst_24 [1, 2] : vector<1x4x256xf32> to vector<1xf32>
    %45 = vector.shape_cast %44 : vector<1xf32> to vector<1x1x1xf32>
    %46 = vector.extract %45[0, 0, 0] : f32 from vector<1x1x1xf32>
    %cst_25 = arith.constant 9.765625E-4 : f32
    %47 = arith.mulf %46, %cst_25 : f32
    %48 = arith.mulf %41, %41 : f32
    %49 = arith.subf %47, %48 : f32
    %cst_26 = arith.constant 0.000000e+00 : f32
    %50 = arith.maximumf %49, %cst_26 : f32
    %cst_27 = arith.constant 9.99999974E-6 : f32
    %51 = arith.addf %50, %cst_27 : f32
    %52 = math.rsqrt %51 : f32
    %53 = vector.broadcast %52 : f32 to vector<4x1xf32>
    %54 = arith.mulf %8, %53 : vector<4x1xf32>
    %55 = vector.broadcast %41 : f32 to vector<4x1xf32>
    %56 = arith.mulf %55, %54 : vector<4x1xf32>
    %57 = arith.subf %9, %56 : vector<4x1xf32>
    %58 = vector.broadcast %54 : vector<4x1xf32> to vector<4x256xf32>
    %59 = arith.mulf %36, %58 : vector<4x256xf32>
    %60 = vector.broadcast %57 : vector<4x1xf32> to vector<4x256xf32>
    %61 = arith.addf %59, %60 : vector<4x256xf32>
    %cst_28 = arith.constant dense<0.000000e+00> : vector<4x256xf32>
    %62 = tpu.matmul %5, %61, %cst_28 {dimension_numbers = #tpu.dot_dimension_numbers<[1], [0], [0], [1], [0, 0, 1, 1], [], []>} : vector<4x4xf32>, vector<4x256xf32>, vector<4x256xf32> -> vector<4x256xf32>
    %63 = vector.extract_strided_slice %28 {offsets = [4, 0], sizes = [4, 256], strides = [1, 1]} : vector<8x256xf32> to vector<4x256xf32>
    %64 = vector.broadcast %6 : vector<4x1xf32> to vector<4x256xf32>
    %65 = arith.addf %63, %64 : vector<4x256xf32>
    %cst_29 = arith.constant 0.000000e+00 : f32
    %66 = vector.broadcast %cst_29 : f32 to vector<4x256xf32>
    %67 = arith.cmpf ogt, %65, %66 : vector<4x256xf32>
    %68 = vector.broadcast %7 : vector<4x1xf32> to vector<4x256xf32>
    %69 = arith.mulf %68, %65 : vector<4x256xf32>
    %70 = arith.select %67, %65, %69 : vector<4x256xi1>, vector<4x256xf32>
    %71 = vector.shape_cast %70 : vector<4x256xf32> to vector<1x4x256xf32>
    %cst_30 = arith.constant dense<0.000000e+00> : vector<1xf32>
    %72 = vector.multi_reduction <add>, %71, %cst_30 [1, 2] : vector<1x4x256xf32> to vector<1xf32>
    %73 = vector.shape_cast %72 : vector<1xf32> to vector<1x1x1xf32>
    %74 = vector.extract %73[0, 0, 0] : f32 from vector<1x1x1xf32>
    %cst_31 = arith.constant 9.765625E-4 : f32
    %75 = arith.mulf %74, %cst_31 : f32
    %76 = arith.mulf %70, %70 : vector<4x256xf32>
    %77 = vector.shape_cast %76 : vector<4x256xf32> to vector<1x4x256xf32>
    %cst_32 = arith.constant dense<0.000000e+00> : vector<1xf32>
    %78 = vector.multi_reduction <add>, %77, %cst_32 [1, 2] : vector<1x4x256xf32> to vector<1xf32>
    %79 = vector.shape_cast %78 : vector<1xf32> to vector<1x1x1xf32>
    %80 = vector.extract %79[0, 0, 0] : f32 from vector<1x1x1xf32>
    %cst_33 = arith.constant 9.765625E-4 : f32
    %81 = arith.mulf %80, %cst_33 : f32
    %82 = arith.mulf %75, %75 : f32
    %83 = arith.subf %81, %82 : f32
    %cst_34 = arith.constant 0.000000e+00 : f32
    %84 = arith.maximumf %83, %cst_34 : f32
    %cst_35 = arith.constant 9.99999974E-6 : f32
    %85 = arith.addf %84, %cst_35 : f32
    %86 = math.rsqrt %85 : f32
    %87 = vector.broadcast %86 : f32 to vector<4x1xf32>
    %88 = arith.mulf %8, %87 : vector<4x1xf32>
    %89 = vector.broadcast %75 : f32 to vector<4x1xf32>
    %90 = arith.mulf %89, %88 : vector<4x1xf32>
    %91 = arith.subf %9, %90 : vector<4x1xf32>
    %92 = vector.broadcast %88 : vector<4x1xf32> to vector<4x256xf32>
    %93 = arith.mulf %70, %92 : vector<4x256xf32>
    %94 = vector.broadcast %91 : vector<4x1xf32> to vector<4x256xf32>
    %95 = arith.addf %93, %94 : vector<4x256xf32>
    %cst_36 = arith.constant dense<0.000000e+00> : vector<4x256xf32>
    %96 = tpu.matmul %5, %95, %cst_36 {dimension_numbers = #tpu.dot_dimension_numbers<[1], [0], [0], [1], [0, 0, 1, 1], [], []>} : vector<4x4xf32>, vector<4x256xf32>, vector<4x256xf32> -> vector<4x256xf32>
    %97 = tpu.concatenate %61, %95 in 0 : vector<4x256xf32>, vector<4x256xf32> -> vector<8x256xf32>
    %c0_37 = arith.constant 0 : index
    %c0_38 = arith.constant 0 : index
    %c0_39 = arith.constant 0 : index
    %98 = vector.load %arg10[%c0_37, %c0_38, %c0_39] : memref<1x8x256xf32, #tpu.memory_space<vmem>>, vector<1x8x256xf32>
    %99 = vector.shape_cast %98 : vector<1x8x256xf32> to vector<8x256xf32>
    %100 = vector.shape_cast %97 : vector<8x256xf32> to vector<1x8x256xf32>
    tpu.vector_store %arg10[%c0_37, %c0_38, %c0_39], %100 {strides = array<i32>} : memref<1x8x256xf32, #tpu.memory_space<vmem>>, vector<1x8x256xf32>,
    %101 = tpu.concatenate %62, %96 in 0 : vector<4x256xf32>, vector<4x256xf32> -> vector<8x256xf32>
    %c0_i32_40 = arith.constant 0 : i32
    %102 = arith.cmpi eq, %arg1, %c0_i32_40 : i32
    %103 = arith.extui %102 : i1 to i32
    %c0_i32_41 = arith.constant 0 : i32
    %104 = arith.cmpi ne, %103, %c0_i32_41 : i32
    scf.if %104 {
      %c0_45 = arith.constant 0 : index
      %c0_46 = arith.constant 0 : index
      %111 = vector.load %arg11[%c0_45, %c0_46] : memref<8x256xf32, #tpu.memory_space<vmem>>, vector<8x256xf32>
      tpu.vector_store %arg11[%c0_45, %c0_46], %101 {strides = array<i32>} : memref<8x256xf32, #tpu.memory_space<vmem>>, vector<8x256xf32>,
    } else {
    }
    %c0_i32_42 = arith.constant 0 : i32
    %105 = arith.cmpi sgt, %arg1, %c0_i32_42 : i32
    %106 = arith.extui %105 : i1 to i32
    %c0_i32_43 = arith.constant 0 : i32
    %107 = arith.cmpi ne, %106, %c0_i32_43 : i32
    scf.if %107 {
      %c0_45 = arith.constant 0 : index
      %c0_46 = arith.constant 0 : index
      %111 = vector.load %arg11[%c0_45, %c0_46] : memref<8x256xf32, #tpu.memory_space<vmem>>, vector<8x256xf32>
      %112 = arith.addf %111, %101 : vector<8x256xf32>
      %c0_47 = arith.constant 0 : index
      %c0_48 = arith.constant 0 : index
      %113 = vector.load %arg11[%c0_47, %c0_48] : memref<8x256xf32, #tpu.memory_space<vmem>>, vector<8x256xf32>
      tpu.vector_store %arg11[%c0_47, %c0_48], %112 {strides = array<i32>} : memref<8x256xf32, #tpu.memory_space<vmem>>, vector<8x256xf32>,
    } else {
    }
    %c10_i32 = arith.constant 10 : i32
    %108 = arith.cmpi eq, %arg1, %c10_i32 : i32
    %109 = arith.extui %108 : i1 to i32
    %c0_i32_44 = arith.constant 0 : i32
    %110 = arith.cmpi ne, %109, %c0_i32_44 : i32
    scf.if %110 {
      %c0_45 = arith.constant 0 : index
      %c0_46 = arith.constant 0 : index
      %111 = vector.load %arg7[%c0_45, %c0_46] : memref<4x2xf32, #tpu.memory_space<vmem>>, vector<4x1xf32>
      %c0_47 = arith.constant 0 : index
      %c1_48 = arith.constant 1 : index
      %112 = vector.load %arg7[%c0_47, %c1_48] : memref<4x2xf32, #tpu.memory_space<vmem>>, vector<4x1xf32>
      %113 = tpu.concatenate %111, %111 in 0 : vector<4x1xf32>, vector<4x1xf32> -> vector<8x1xf32>
      %114 = tpu.concatenate %112, %112 in 0 : vector<4x1xf32>, vector<4x1xf32> -> vector<8x1xf32>
      %c0_49 = arith.constant 0 : index
      %c0_50 = arith.constant 0 : index
      %115 = vector.load %arg11[%c0_49, %c0_50] : memref<8x256xf32, #tpu.memory_space<vmem>>, vector<8x256xf32>
      %116 = vector.broadcast %113 : vector<8x1xf32> to vector<8x256xf32>
      %117 = arith.addf %115, %116 : vector<8x256xf32>
      %cst_51 = arith.constant 0.000000e+00 : f32
      %118 = vector.broadcast %cst_51 : f32 to vector<8x256xf32>
      %119 = arith.cmpf ogt, %117, %118 : vector<8x256xf32>
      %120 = vector.broadcast %114 : vector<8x1xf32> to vector<8x256xf32>
      %121 = arith.mulf %120, %117 : vector<8x256xf32>
      %122 = arith.select %119, %117, %121 : vector<8x256xi1>, vector<8x256xf32>
      %c0_52 = arith.constant 0 : index
      %c0_53 = arith.constant 0 : index
      %123 = vector.load %arg11[%c0_52, %c0_53] : memref<8x256xf32, #tpu.memory_space<vmem>>, vector<8x256xf32>
      tpu.vector_store %arg11[%c0_52, %c0_53], %122 {strides = array<i32>} : memref<8x256xf32, #tpu.memory_space<vmem>>, vector<8x256xf32>,
    } else {
    }
    return
  }
  func.func @transform_0(%arg0: i32, %arg1: i32, %arg2: memref<11xi32, #tpu.memory_space<smem>>) -> (i32, i32, i32, i32) {
    %c0_i32 = arith.constant 0 : i32
    %c0_i32_0 = arith.constant 0 : i32
    %c0_i32_1 = arith.constant 0 : i32
    return %arg1, %arg0, %c0_i32, %c0_i32_0 : i32, i32, i32, i32
  }
  func.func @transform_1(%arg0: i32, %arg1: i32, %arg2: memref<11xi32, #tpu.memory_space<smem>>) -> (i32, i32, i32) {
    %c0_i32 = arith.constant 0 : i32
    %c0_i32_0 = arith.constant 0 : i32
    %c0_i32_1 = arith.constant 0 : i32
    return %arg1, %c0_i32, %c0_i32_0 : i32, i32, i32
  }
  func.func @transform_2(%arg0: i32, %arg1: i32, %arg2: memref<11xi32, #tpu.memory_space<smem>>) -> (i32, i32, i32) {
    %c0_i32 = arith.constant 0 : i32
    %c0_i32_0 = arith.constant 0 : i32
    %c0_i32_1 = arith.constant 0 : i32
    return %arg1, %c0_i32, %c0_i32_0 : i32, i32, i32
  }
  func.func @transform_3(%arg0: i32, %arg1: i32, %arg2: memref<11xi32, #tpu.memory_space<smem>>) -> (i32, i32, i32) {
    %c0_i32 = arith.constant 0 : i32
    %c0_i32_0 = arith.constant 0 : i32
    %c0_i32_1 = arith.constant 0 : i32
    return %arg1, %c0_i32, %c0_i32_0 : i32, i32, i32
  }
  func.func @transform_4(%arg0: i32, %arg1: i32, %arg2: memref<11xi32, #tpu.memory_space<smem>>) -> (i32, i32) {
    %c0_i32 = arith.constant 0 : i32
    %c0_i32_0 = arith.constant 0 : i32
    %c0_i32_1 = arith.constant 0 : i32
    return %c0_i32, %c0_i32_0 : i32, i32
  }
  func.func @transform_5(%arg0: i32, %arg1: i32, %arg2: memref<11xi32, #tpu.memory_space<smem>>) -> (i32, i32) {
    %c0_i32 = arith.constant 0 : i32
    %c0_i32_0 = arith.constant 0 : i32
    %c0_i32_1 = arith.constant 0 : i32
    return %c0_i32, %c0_i32_0 : i32, i32
  }
  func.func @transform_6(%arg0: i32, %arg1: i32, %arg2: memref<11xi32, #tpu.memory_space<smem>>) -> (i32, i32) {
    %c0_i32 = arith.constant 0 : i32
    %c0_i32_0 = arith.constant 0 : i32
    %c0_i32_1 = arith.constant 0 : i32
    return %c0_i32, %c0_i32_0 : i32, i32
  }
  func.func @transform_7(%arg0: i32, %arg1: i32, %arg2: memref<11xi32, #tpu.memory_space<smem>>) -> (i32, i32, i32) {
    %c0_i32 = arith.constant 0 : i32
    %c0_i32_0 = arith.constant 0 : i32
    return %arg1, %arg0, %c0_i32 : i32, i32, i32
  }
  func.func @transform_8(%arg0: i32, %arg1: i32, %arg2: memref<11xi32, #tpu.memory_space<smem>>) -> (i32, i32) {
    %c0_i32 = arith.constant 0 : i32
    %c0_i32_0 = arith.constant 0 : i32
    return %arg0, %c0_i32 : i32, i32
  }
}

</mosaic_0001>

<bundles_post_ra>
// kernel: tpu_custom_call.1
= control target key start
LH: loop header
LB: loop body
LE: loop exit
PB: predicated region body
PF: predicated region fallthrough
CT: control target
= control target key end

     0   :  { %s2059_s0 = inlined_call_operand.vmem [shape: s32[11], index: 0, kind: input, shape index: {}]   ;;  %s2060_s1 = inlined_call_operand.hbm [shape: f32[11,2,8,256], index: 1, kind: input, shape index: {}]   ;;  %s2061_s2 = inlined_call_operand.vmem [shape: f32[11,4,8], index: 2, kind: input, shape index: {}]   ;;  %s2062_s3 = inlined_call_operand.vmem [shape: f32[11,4,4], index: 3, kind: input, shape index: {}]   ;;  %s2063_s4 = inlined_call_operand.vmem [shape: f32[11,4,4], index: 4, kind: input, shape index: {}]   ;;  %s2064_s5 = inlined_call_operand.vmem [shape: f32[4,2], index: 5, kind: input, shape index: {}]   ;;  %s2065_s6 = inlined_call_operand.vmem [shape: f32[64,256], index: 6, kind: input, shape index: {}]   ;;  %s2066_s7 = inlined_call_operand.vmem [shape: f32[16,256], index: 7, kind: input, shape index: {}]   ;;  %s2067_s8 = inlined_call_operand.hbm [shape: f32[11,8,256], index: 8, kind: output, shape index: {0}]   ;;  %s2068_s9 = inlined_call_operand.hbm [shape: f32[8,256], index: 9, kind: output, shape index: {1}]  }
   0x1   :  { %2074 = sst [smem:[#allocation17_spill]] %s2060_s1  ;;  %s15_s11 = sshll.u32 %s2059_s0, 4  ;;  %s16_s11 = int_to_ptr.vmem [resolvable:$true] %s15_s11 }
   0x2   :  { %s1478_s12 = scalar_lea.vmem %s16_s11, 16  ;;  %p1483_p1 = scmp.lt.s32.totalorder %s16_s11, %s16_s11 }
   0x3   :  { %p1479_p0 = scmp.ne.s32.totalorder %s16_s11, %s1478_s12  ;;  %p1484_p2 = scmp.lt.s32.totalorder %s1478_s12, %s1478_s12 }
   0x5   :  { %p1485_p3 = por %p1484_p2, %p1483_p1 }
   0x7   :  { %p1486_p4 = pnand %p1485_p3, %p1479_p0 }
   0x9   :  { %1489 = shalt.err (!%p1486_p4)  }
   0xa   :  { %s1636_s13 = smov [#allocation4]  }
   0xb   :  { %18 = dma.vmem_to_smem %s16_s11, 16, %s1636_s13, [#allocation3] }
   0xc   :  { %1598 = dma.done.wait [#allocation3], 16 }
   0xd   :  { %1599 = vsyncadd [#allocation3], 4294967280 }
   0xe   :  { %20 = sfence }
   0xf   :  { %21 = vsyncpa [#allocation6], 0 }
  0x10   :  { %23 = vsyncpa [#allocation6 + $0x1], 0 }
  0x11   :  { %24 = vsyncpa [#allocation7], 0 }
  0x12   :  { %26 = vsyncpa [#allocation7 + $0x1], 0 }
  0x13   :  { %27 = vsyncpa [#allocation10], 0  ;;  %s1706_s14 = smov 0   ;;  %s1708_s0 = smov 0  }
  0x14   :  { %s1710_s15 = smov 0   ;;  %s1712_s16 = smov 0  }
  0x15   :  { %s1714_s17 = smov 0   ;;  %s1716_s18 = smov 0  }
  0x16 LB: > { %2075 = sst [smem:[#allocation15_spill]] %s1630_s17  ;;  %s1311_s19 = sadd.s32 4294967295, %s1634_s18   ;;  %s1634_s18 = sphi %s1716_s18, %s33_s18   ;;  %s1630_s17 = sphi %s1714_s17, %s2090_s17   ;;  %s1626_s16 = sphi %s1712_s16, %s2089_s16   ;;  %s1622_s15 = sphi %s1710_s15, %s2093_s15   ;;  %s1618_s0 = sphi %s1708_s0, %s2092_s0   ;;  %s1614_s14 = sphi %s1706_s14, %s2091_s14  }
  0x17   : > { %s1312_s20 = sadd.s32 4294967294, %s1634_s18   ;;  %s42_s21 = sadd.s32 1, %s1630_s17 }
  0x18   : > { %s54_s22 = sadd.s32 1, %s1622_s15  ;;  %p43_p5 = scmp.ge.s32.totalorder %s42_s21, 11 }
  0x19   : > { %p61_p6 = scmp.ne.s32.totalorder %s1622_s15, %s1618_s0  ;;  %p62_p7 = scmp.eq.s32.totalorder %s1634_s18, 0 }
  0x1a   : > { %p67_p8 = scmp.ne.s32.totalorder %s1618_s0, %s1614_s14  ;;  %s2095_s21 = smov (%p43_p5, %s42_s21), 0 }
  0x1b   : > { %2076 = sst [smem:[#allocation16_spill]] %s2095_s21  ;;  %p1747_p9 = por %p62_p7, %p61_p6 }
  0x1c   : > { %p68_p10 = scmp.eq.s32.totalorder %s1311_s19, 0  ;;  %s49_s24 = ssub.s32 %s1630_s17, %s2095_s21 }
  0x1d   : > { %p1753_p11 = scmp.eq.s32.totalorder %s1311_s19, 10  ;;  %p52_p12 = scmp.eq.s32.totalorder %s49_s24, 0 }
  0x1e   : > { %p1757_p13 = por %p68_p10, %p67_p8  ;;  %p240_p1 = scmp.eq.s32.totalorder %s1312_s20, 10 }
  0x1f   : > { %s2078_s25 = scalar_select %p1753_p11, 1, 0 }
  0x20   : > { %p1763_p0 = por %p1753_p11, %p61_p6  ;;  %p1770_p2 = por %p240_p1, %p67_p8 }
  0x21   : > { %s1768_s28 = scalar_select %p52_p12, %s1622_s15, %s54_s22  }
  0x22   : > { %s2080_s27 = scalar_select %p1763_p0, 1, 0 }
  0x23   : > { %s2081_s29 = scalar_select %p1770_p2, 1, 0 }
  0x24   : > { %p1399_p3 = scmp.lt.s32.totalorder %s1634_s18, 11  ;;  %s295_s30 = sand.u32 1, %s1622_s15  }
  0x25   : > { %s1315_s10 = sshll.u32 %s295_s30, 5  ;;  %s1349_s11 = sshll.u32 %s1630_s17, 9 }
  0x26   : > { %s2082_s1 = sld [smem:[#allocation17_spill]]  ;;  %s299_s20 = scalar_lea.vmem [#allocation5], %s1315_s10 }
  0x27   : > { %s309_s22 = sshll.u32 %s299_s20, 4  ;;  %p1786_p4 = pnand %p1399_p3, %p1747_p9  ;;  %s1782_s22 = int_to_ptr.vmem [resolvable:$true] %s309_s22 }
  0x28   : > { %s1791_s21 = scalar_lea.sflag [#allocation6], %s295_s30 }
  0x29   : > { %p1492_p7 = pneg %p1786_p4 }
  0x2c   : > { %s1780_s19 = scalar_lea.hbm %s2082_s1, %s1349_s11  ;;  %s1495_s23 = scalar_lea.hbm %s2082_s1, 5632 }
  0x2d   : > { %s1490_s11 = scalar_lea.hbm %s1780_s19, 512  ;;  %p1496_p9 = scmp.lt.u32.totalorder %s1780_s19, %s2082_s1 }
  0x2e   : > { %p1491_p6 = scmp.ne.s32.totalorder %s1780_s19, %s1490_s11  ;;  %p1497_p12 = scmp.lt.u32.totalorder %s1495_s23, %s1490_s11 }
  0x2f   : > { %p1499_p3 = scmp.lt.u32.totalorder %s1490_s11, %s1780_s19 }
  0x30   : > { %p1493_p8 = pnand %p1492_p7, %p1491_p6  ;;  %p1498_p1 = por %p1497_p12, %p1496_p9 }
  0x32   : > { %p1494_p10 = pneg %p1493_p8  ;;  %p1500_p5 = por %p1499_p3, %p1498_p1 }
  0x34   : > { %p1501_p2 = pnand %p1500_p5, %p1494_p10 }
  0x36   : > { %1504 = shalt.err (!%p1501_p2)
}
  0x37   : > { %s1505_s30 = scalar_lea.vmem %s1782_s22, 512  ;;  %s1637_s10 = smov [#allocation5]  }
  0x38   : > { %p1506_p6 = scmp.ne.s32.totalorder %s1782_s22, %s1505_s30  ;;  %s1510_s12 = sshll.u32 %s1637_s10, 4  ;;  %s1511_s12 = int_to_ptr.vmem [resolvable:$false] %s1510_s12 }
  0x39   : > { %s1512_s13 = scalar_lea.vmem %s1511_s12, 1024  ;;  %p1513_p0 = scmp.lt.s32.totalorder %s1782_s22, %s1511_s12 }
  0x3a   : > { %p1508_p8 = pnand %p1506_p6, %p1492_p7  ;;  %p1514_p9 = scmp.lt.s32.totalorder %s1512_s13, %s1505_s30 }
  0x3c   : > { %p1509_p11 = pneg %p1508_p8  ;;  %p1515_p12 = por %p1514_p9, %p1513_p0 }
  0x3e   : > { %p1516_p1 = pnand %p1515_p12, %p1509_p11 }
  0x40   : > { %1519 = shalt.err (!%p1516_p1)
}
  0x41   : > { %s1638_s11 = smov 256   ;;  %s1639_s23 = smov 16  }
  0x42   : > { %1394 = dma.hbm_to_vmem [thread:$0]  (!%p1786_p4), %s1780_s19, 512, %s1782_s22, %s1791_s21, %s1638_s11, %s1638_s11, %s1639_s23  }
  0x43   : > { %p338_p2 = scmp.lt.s32.totalorder %s1634_s18, 12  ;;  %p2084_p5 = scmp.ge.s32.totalorder %s1634_s18, 1 }
  0x45   : > { %p339_p7 = pnand %p2084_p5, %p338_p2 }
  0x46   : > { %s1823_s20 = sand.u32 (!%p339_p7), 1, %s1618_s0  }
  0x47   : > { %342 = sbr.rel (%p339_p7) target bundleno = 1927 (0x787), region = 48  ;;  %s1319_s30 = sshll.u32 (!%p339_p7), %s1823_s20, 5 }
  0x48   : > { %s345_s10 = scalar_lea.sflag (!%p339_p7), [#allocation6], %s1823_s20  ;;  %s348_s12 = scalar_lea.vmem (!%p339_p7), [#allocation5], %s1319_s30 }
  0x4e   : > { %1601 = dma.done.wait (%p1757_p13), %s345_s10, 512  }
  0x4f   : > { %1603 = vsyncadd (%p1757_p13), %s345_s10, 4294966784  ;;  %p394_p11 = scmp.lt.s32.totalorder %s1626_s16, 10  ;;  %s1834_s19 = sld [smem:[#allocation4 + %s1626_s16]]  ;;  %v1640_v0 = vmov 0.0   ;;  %v1326_v1 = vld [vmem:[%s348_s12 + $0x18] sm:$0xff]  ;;  %v410_v2 = vld [vmem:[%s348_s12 + $0x8] sm:$0xff] }
  0x50   : > { %553 = vmatprep.mubr.f32.mxu1 %v1640_v0  ;;  %479 = vmatprep.mubr.f32.mxu0 %v1640_v0  ;;  %v1325_v3 = vld [vmem:[%s348_s12 + $0x10] sm:$0xff]  ;;  %vm411_vm0 = vcmask 64512   ;;  %v409_v4 = vld [vmem:[%s348_s12] sm:$0xff]  ;;  %vm566_vm1 = vcmask 1043456   ;;  %s2085_s1 = sshll.u32 %s1823_s20, 4 }
  0x51   : > { %s395_s22 = scalar_select %p394_p11, %s1626_s16, 10  ;;  %489 = vmatprep.subr.mxu1 %v1326_v1  ;;  %415 = vmatprep.subr.mxu0 %v410_v2 }
  0x52   : > { %490 = vmatpush1.msra.mxu1 %v1325_v3  ;;  %416 = vmatpush1.msra.mxu0 %v409_v4  ;;  %s1858_s12 = scalar_lea.vmem [#allocation8], %s2085_s1 }
  0x53   : > { %s1321_s24 = sshll.u32 %s395_s22, 2 }
  0x54   : > { %s397_s26 = scalar_lea.vmem %s2061_s2, %s1321_s24  ;;  %s401_s10 = scalar_lea.vmem %s2062_s3, %s1321_s24 }
  0x55   : > { %s405_s17 = scalar_lea.vmem %s2063_s4, %s1321_s24  ;;  %v406_v5 = vld [vmem:[%s397_s26] sm:$0xf]  ;;  %p1328_p13 = scmp.ne.s32.totalorder %s1834_s19, 0 }
  0x56   : > { %v1848_v6 = vld [vmem:[%s401_s10] sm:$0xf]  ;;  %1327 = vmatmul.mubr.msk.f32.vlgmr.msra.gmra.mrb[0].mxu1 %vm411_vm0, %v406_v5  ;;  %1324 = vmatmul.mubr.msk.f32.vlgmr.msra.gmra.mrb[0].mxu0 %vm411_vm0, %v406_v5 }
  0x57   : > { %v1850_v7 = vld [vmem:[%s405_s17] sm:$0xf] }
 0x127   : > { %573 = sbr.rel (%p1328_p13) target bundleno = 303 (0x12f), region = 56 }
 0x129   : > { %v555_v8 = vpop.f32.mrb[0].mxu1  ;;  %v481_v9 = vpop.f32.mrb[0].mxu0 }
 0x12a   : > { %v562_v10 = vrot.slane %v555_v8, 4  ;;  %v557_v11 = vpop.f32.mrb[1].mxu1  ;;  %v483_v12 = vpop.f32.mrb[1].mxu0 }
 0x12b   : > { %v563_v13 = vrot.slane %v557_v11, 4 }
 0x12c   : > { %v1853_v14 = vsel %vm566_vm1, %v481_v9, %v562_v10 }
 0x12d   : > { %v568_v15 = vsel %vm566_vm1, %v483_v12, %v563_v13  ;;  %574 = vst [vmem:[#allocation2] sm:$0xff] (!%p1328_p13), %v1853_v14 }
 0x12e   : > { %575 = vst [vmem:[#allocation2 + $0x8] sm:$0xff] %v568_v15 }
 0x12f PF: > { %p1329_p0 = scmp.ne.s32.totalorder %s1834_s19, 1 }
 0x130   : > { %v581_v16 = vld [vmem:[%s2065_s6 + $0x8] sm:$0xff] (!%p1329_p0)  ;;  %v583_v17 = vld [vmem:[%s2065_s6 + $0x18] sm:$0xff] (!%p1329_p0)  ;;  %v580_v18 = vld [vmem:[%s2065_s6] sm:$0xff] (!%p1329_p0)  ;;  %v1641_v23 = vmov (!%p1329_p0), 0.0   ;;  %vm596_vm2 = vcmask (!%p1329_p0), 523264  }
 0x131   : > { %579 = sbr.rel (%p1329_p0) target bundleno = 537 (0x219), region = 60  ;;  %v1351_v19 = vpack.c.bf16 (!%p1329_p0), %v583_v17, %v581_v16  ;;  %v582_v20 = vld [vmem:[%s2065_s6 + $0x10] sm:$0xff] (!%p1329_p0)  ;;  %v585_v21 = vld [vmem:[%s2065_s6 + $0x28] sm:$0xff] (!%p1329_p0)  ;;  %v587_v22 = vld [vmem:[%s2065_s6 + $0x38] sm:$0xff] (!%p1329_p0)  ;;  %664 = vmatprep.mubr.f32.mxu0 (!%p1329_p0), %v1641_v23 }
 0x132   : > { %v1353_v24 = vpack.c.bf16 (!%p1329_p0), %v582_v20, %v580_v18  ;;  %v1355_v25 = vpack.c.bf16 (!%p1329_p0), %v587_v22, %v585_v21  ;;  %v584_v26 = vld [vmem:[%s2065_s6 + $0x20] sm:$0xff] (!%p1329_p0)  ;;  %v586_v27 = vld [vmem:[%s2065_s6 + $0x30] sm:$0xff] (!%p1329_p0)  ;;  %v589_v28 = vld [vmem:[%s2065_s6 + $0x48] sm:$0xff] (!%p1329_p0) }
 0x133   : > { %1352 = vmatprep.subr.bf16.mxu0 (!%p1329_p0), %v1351_v19  ;;  %v591_v29 = vld [vmem:[%s2065_s6 + $0x58] sm:$0xff] (!%p1329_p0)  ;;  %v1357_v30 = vpack.c.bf16 (!%p1329_p0), %v586_v27, %v584_v26  ;;  %v588_v32 = vld [vmem:[%s2065_s6 + $0x40] sm:$0xff] (!%p1329_p0)  ;;  %v590_v33 = vld [vmem:[%s2065_s6 + $0x50] sm:$0xff] (!%p1329_p0) }
 0x134   : > { %1354 = vmatpush1.bf16.msra.mxu0 (!%p1329_p0), %v1353_v24  ;;  %v1359_v31 = vpack.c.bf16 (!%p1329_p0), %v591_v29, %v589_v28  ;;  %v593_v34 = vld [vmem:[%s2065_s6 + $0x68] sm:$0xff] (!%p1329_p0)  ;;  %v595_v35 = vld [vmem:[%s2065_s6 + $0x78] sm:$0xff] (!%p1329_p0)  ;;  %v1361_v36 = vpack.c.bf16 (!%p1329_p0), %v590_v33, %v588_v32  ;;  %v592_v38 = vld [vmem:[%s2065_s6 + $0x60] sm:$0xff] (!%p1329_p0) }
 0x135   : > { %1356 = vmatprep.subr.bf16.mxu0 (!%p1329_p0), %v1355_v25  ;;  %v1363_v37 = vpack.c.bf16 (!%p1329_p0), %v595_v35, %v593_v34  ;;  %v594_v39 = vld [vmem:[%s2065_s6 + $0x70] sm:$0xff] (!%p1329_p0) }
 0x136   : > { %v1365_v40 = vpack.c.bf16 (!%p1329_p0), %v594_v39, %v592_v38 }
 0x138   : > { %1358 = vmatpush1.bf16.msra.mxu0 %v1357_v30 }
 0x139   : > { %1360 = vmatprep.subr.bf16.mxu0 %v1359_v31 }
 0x13c   : > { %1362 = vmatpush1.bf16.msra.mxu0 %v1361_v36 }
 0x13d   : > { %1364 = vmatprep.subr.bf16.mxu0 %v1363_v37 }
 0x140   : > { %1366 = vmatpush1.bf16.msra.mxu0 %v1365_v40 }
 0x143   : > { %1330 = vmatmul.mubr.msk.f32.vlgmr.msra.gmra.mrb[0].mxu0 %vm596_vm2, %v1853_v14 }
 0x216   : > { %v666_v41 = vpop.f32.mrb[0].mxu0 }
 0x217   : > { %671 = vst [vmem:[#allocation2] sm:$0xff] %v666_v41  ;;  %v668_v42 = vpop.f32.mrb[1].mxu0 }
 0x218   : > { %672 = vst [vmem:[#allocation2 + $0x8] sm:$0xff] %v668_v42 }
 0x219 PF: > { %p1331_p4 = scmp.ne.s32.totalorder %s1834_s19, 2 }
 0x21a   : > { %v678_v43 = vld [vmem:[%s2066_s7 + $0x8] sm:$0xff] (!%p1331_p4)  ;;  %v680_v44 = vld [vmem:[%s2066_s7 + $0x18] sm:$0xff] (!%p1331_p4)  ;;  %v677_v45 = vld [vmem:[%s2066_s7] sm:$0xff] (!%p1331_p4)  ;;  %v1642_v48 = vmov (!%p1331_p4), 0.0   ;;  %vm681_vm3 = vcmask (!%p1331_p4), 130048  }
 0x21b   : > { %676 = sbr.rel (%p1331_p4) target bundleno = 759 (0x2f7), region = 64  ;;  %v1367_v46 = vpack.c.bf16 (!%p1331_p4), %v680_v44, %v678_v43  ;;  %v679_v47 = vld [vmem:[%s2066_s7 + $0x10] sm:$0xff] (!%p1331_p4)  ;;  %749 = vmatprep.mubr.f32.mxu0 (!%p1331_p4), %v1642_v48 }
 0x21c   : > { %v1369_v49 = vpack.c.bf16 (!%p1331_p4), %v679_v47, %v677_v45 }
 0x21d   : > { %1368 = vmatprep.subr.bf16.mxu0 (!%p1331_p4), %v1367_v46 }
 0x21e   : > { %1370 = vmatpush1.bf16.msra.mxu0 (!%p1331_p4), %v1369_v49 }
 0x221   : > { %1332 = vmatmul.mubr.msk.f32.vlgmr.msra.gmra.mrb[0].mxu0 (!%p1331_p4), %vm681_vm3, %v1853_v14 }
 0x2f4   : > { %v751_v50 = vpop.f32.mrb[0].mxu0 }
 0x2f5   : > { %756 = vst [vmem:[#allocation2] sm:$0xff] %v751_v50  ;;  %v753_v51 = vpop.f32.mrb[1].mxu0 }
 0x2f6   : > { %757 = vst [vmem:[#allocation2 + $0x8] sm:$0xff] %v753_v51 }
 0x2f7 PF: > { %1082 = vmatprep.mubr.f32.mxu1 %v1640_v0  ;;  %909 = vmatprep.mubr.f32.mxu0 %v1640_v0  ;;  %v1643_v52 = vmov 0   ;;  %v1644_v53 = vmov 1   ;;  %s1645_s21 = smov 0.0   ;;  %vm835_vm8 = vcmask 31744   ;;  %p1339_p10 = scmp.ne.s32.totalorder %s1626_s16, 0 }
 0x2f8   : > { %1466 = vset.pattern.permute.xlu0 %v1643_v52 }
 0x2f9   : > { %762 = vperm.xlu0 %1466, %v1848_v6  }
 0x2fc   : > { %v758_v55 = vld [vmem:[#allocation2] sm:$0xff] }
 0x2fd   : > { %1467 = vset.pattern.permute.xlu0 %v1644_v53  ;;  %v759_v56 = vld [vmem:[#allocation2 + $0x8] sm:$0xff] }
 0x2fe   : > { %770 = vperm.xlu0 %1467, %v1848_v6  }
 0x378   : > { %v763_v54 = vpop.permute.xlu0 %762 }
 0x379   : > { %v916_v57 = vrot.slane %v763_v54, 4  ;;  %v765_v58 = vadd.f32 %v763_v54, %v758_v55  ;;  %v766_v59 = vadd.f32 %v763_v54, %v759_v56 }
 0x37b   : > { %v918_v60 = vadd.f32 %v916_v57, %v758_v55  ;;  %v919_v61 = vadd.f32 %v916_v57, %v759_v56  ;;  %vm767_vm4 = vcmp.gt.f32.partialorder %v765_v58, 0.0  ;;  %vm768_vm5 = vcmp.gt.f32.partialorder %v766_v59, 0.0 }
 0x37d   : > { %v771_v62 = vpop.permute.xlu0 %770  ;;  %v924_v63 = vrot.slane %v918_v60, 4  ;;  %v925_v1 = vrot.slane %v919_v61, 4  ;;  %vm920_vm6 = vcmp.gt.f32.partialorder %v918_v60, 0.0  ;;  %vm921_vm7 = vcmp.gt.f32.partialorder %v919_v61, 0.0 }
 0x37e   : > { %v773_v0 = vmul.f32 %v771_v62, %v765_v58  ;;  %v774_v2 = vmul.f32 %v771_v62, %v766_v59 }
 0x37f   : > { %v928_v3 = vmul.f32 %v924_v63, %v771_v62  ;;  %v929_v4 = vmul.f32 %v925_v1, %v771_v62  ;;  %v1646_v63 = vmov 2  }
 0x380   : > { %v1930_v5 = vsel %vm767_vm4, %v765_v58, %v773_v0  ;;  %v1932_v8 = vsel %vm768_vm5, %v766_v59, %v774_v2  ;;  %1468 = vset.pattern.permute.xlu1 %v1646_v63  ;;  %v1647_v2 = vmov 3  }
 0x381   : > { %v932_v9 = vrot.slane %v928_v3, 4  ;;  %v933_v10 = vrot.slane %v929_v4, 4  ;;  %v777_v11 = vsel %vm566_vm1, %v1930_v5, 0.0  ;;  %v778_v12 = vsel %vm566_vm1, %v1932_v8, 0.0  ;;  %1471 = vset.pattern.permute.xlu0 %v1647_v2 }
 0x382   : > { %v779_v13 = vadd.f32 %v778_v12, %v777_v11  ;;  %v790_v14 = vmul.f32 %v1930_v5, %v1930_v5  ;;  %v791_v15 = vmul.f32 %v1932_v8, %v1932_v8 }
 0x383   : > { %v1942_v16 = vsel %vm920_vm6, %v918_v60, %v932_v9  ;;  %v1944_v17 = vsel %vm921_vm7, %v919_v61, %v933_v10 }
 0x384   : > { %780 = vadd.xlane.f32.xlu1 %v779_v13  ;;  %v792_v18 = vsel %vm566_vm1, %v790_v14, 0.0  ;;  %v793_v19 = vsel %vm566_vm1, %v791_v15, 0.0  ;;  %v957_v20 = vmul.f32 %v1942_v16, %v1942_v16  ;;  %v958_v21 = vmul.f32 %v1944_v17, %v1944_v17 }
 0x385   : > { %v940_v22 = vrot.slane %v1942_v16, 4  ;;  %v941_v23 = vrot.slane %v1944_v17, 4  ;;  %v794_v24 = vadd.f32 %v793_v19, %v792_v18 }
 0x386   : > { %v961_v25 = vrot.slane %v957_v20, 4  ;;  %v962_v26 = vrot.slane %v958_v21, 4 }
 0x387   : > { %v944_v27 = vsel %vm566_vm1, %v940_v22, 0.0  ;;  %v945_v28 = vsel %vm566_vm1, %v941_v23, 0.0 }
 0x388   : > { %795 = vadd.xlane.f32.xlu1 %v794_v24  ;;  %v965_v29 = vsel %vm566_vm1, %v961_v25, 0.0  ;;  %v966_v30 = vsel %vm566_vm1, %v962_v26, 0.0  ;;  %v946_v32 = vadd.f32 %v945_v28, %v944_v27 }
 0x389   : > { %v967_v31 = vadd.f32 %v966_v30, %v965_v29 }
 0x38b   : > { %968 = vadd.xlane.f32.xlu0 %v967_v31 }
 0x38c   : > { %947 = vadd.xlane.f32.xlu1 %v946_v32 }
 0x411   : > { %v781_v33 = vpop.xlane.xlu1 %780 }
 0x412   : > { %v782_v34 = vrot.slane %v781_v33, 4 }
 0x414   : > { %v783_v35 = vadd.f32 %v782_v34, %v781_v33 }
 0x415   : > { %v796_v36 = vpop.xlane.xlu1 %795 }
 0x416   : > { %v784_v37 = vrot.slane %v783_v35, 2  ;;  %v797_v38 = vrot.slane %v796_v36, 4 }
 0x418   : > { %v798_v39 = vadd.f32 %v797_v38, %v796_v36  ;;  %v785_v40 = vadd.f32 %v784_v37, %v783_v35  ;;  %v969_v48 = vpop.xlane.xlu0 %968 }
 0x419   : > { %v948_v47 = vpop.xlane.xlu1 %947  ;;  %v970_v50 = vrot.slane %v969_v48, 4 }
 0x41a   : > { %v799_v41 = vrot.slane %v798_v39, 2  ;;  %v786_v42 = vrot.slane %v785_v40, 1  ;;  %v949_v49 = vrot.slane %v948_v47, 4 }
 0x41b   : > { %v971_v52 = vadd.f32 %v970_v50, %v969_v48 }
 0x41c   : > { %v787_v43 = vadd.f32 %v786_v42, %v785_v40  ;;  %v800_v44 = vadd.f32 %v799_v41, %v798_v39  ;;  %v950_v51 = vadd.f32 %v949_v49, %v948_v47 }
 0x41d   : > { %v972_v54 = vrot.slane %v971_v52, 2 }
 0x41e   : > { %1371 = vpush %v787_v43  ;;  %v801_v45 = vrot.slane %v800_v44, 1  ;;  %v951_v53 = vrot.slane %v950_v51, 2 }
 0x41f   : > { %v973_v57 = vadd.f32 %v972_v54, %v971_v52 }
 0x420   : > { %v802_v46 = vadd.f32 %v801_v45, %v800_v44  ;;  %v952_v56 = vadd.f32 %v951_v53, %v950_v51 }
 0x421   : > { %v974_v59 = vrot.slane %v973_v57, 1 }
 0x422   : > { %1373 = vpush %v802_v46  ;;  %v953_v58 = vrot.slane %v952_v56, 1 }
 0x423   : > { %v975_v62 = vadd.f32 %v974_v59, %v973_v57 }
 0x424   : > { %v954_v61 = vadd.f32 %v953_v58, %v952_v56 }
 0x44f   : > { %s1372_s19 = spop %1371 }
 0x450   : > { %s1958_s23 = smul.f32 0.0009765625, %s1372_s19 }
 0x452   : > { %s805_s30 = smul.f32 %s1958_s23, %s1958_s23  ;;  %v814_v13 = vstv %s1958_s23 }
 0x453   : > { %s1374_s10 = spop %1373 }
 0x454   : > { %s804_s1 = smul.f32 0.0009765625, %s1374_s10 }
 0x456   : > { %s806_s17 = ssub.f32 %s804_s1, %s805_s30 }
 0x458   : > { %s807_s22 = smax.f32 %s1645_s21, %s806_s17 }
 0x459   : > { %s808_s24 = sadd.f32 1e-05, %s807_s22 }
 0x45b   : > { %v809_v55 = vstv %s808_s24 }
 0x45c   : > { %1472 = vrsqrt.f32 %v809_v55 }
 0x466   : > { %v1473_v60 = vpop.eup %1472 }
 0x467   : > { %1375 = vpush %v1473_v60 }
 0x468   : > { %1377 = vpush %v954_v61 }
 0x469   : > { %1379 = vpush %v975_v62 }
 0x498   : > { %s1376_s13 = spop %1375 }
 0x499   : > { %s1378_s11 = spop %1377  ;;  %v812_v3 = vstv %s1376_s13 }
 0x49a   : > { %s956_s26 = smul.f32 0.0009765625, %s1378_s11  ;;  %s1380_s19 = spop %1379  ;;  %v813_v11 = vmul.f32 %v812_v3, %v1848_v6 }
 0x49b   : > { %s977_s30 = smul.f32 0.0009765625, %s1380_s19  ;;  %s1648_s11 = smov 1  }
 0x49c   : > { %s978_s10 = smul.f32 %s956_s26, %s956_s26  ;;  %v987_v10 = vstv %s956_s26  ;;  %v815_v14 = vmul.f32 %v814_v13, %v813_v11 }
 0x49e   : > { %s979_s1 = ssub.f32 %s977_s30, %s978_s10 }
 0x4a0   : > { %s980_s17 = smax.f32 %s1645_s21, %s979_s1 }
 0x4a1   : > { %s981_s22 = sadd.f32 1e-05, %s980_s17 }
 0x4a3   : > { %v982_v1 = vstv %s981_s22 }
 0x4a4   : > { %1474 = vrsqrt.f32 %v982_v1 }
 0x4ae   : > { %v1475_v0 = vpop.eup %1474 }
 0x4af   : > { %1381 = vpush %v1475_v0 }
 0x4e0   : > { %s1382_s24 = spop %1381 }
 0x4e1   : > { %v985_v4 = vstv %s1382_s24 }
 0x4e2   : > { %v986_v9 = vmul.f32 %v985_v4, %v1848_v6 }
 0x4e4   : > { %v988_v12 = vmul.f32 %v987_v10, %v986_v9 }
 0x4e6   : > { %990 = vrot.lane.b32.xlu1 %v988_v12, %s1648_s11 }
 0x4ea   : > { %817 = vrot.lane.b32.xlu1 %v815_v14, %s1648_s11 }
 0x4ee   : > { %996 = vperm.xlu1 %1468, %v986_v9  }
 0x4f2   : > { %1469 = vset.pattern.permute.xlu1 %v1647_v2 }
 0x558   : > { %v991_v15 = vpop.permute.xlu1 %990 }
 0x559   : > { %v993_v18 = vsub.f32 %v1848_v6, %v991_v15 }
 0x55b   : > { %1004 = vperm.xlu1 %1469, %v993_v18  }
 0x55c   : > { %v818_v19 = vpop.permute.xlu1 %817 }
 0x55d   : > { %v820_v20 = vsub.f32 %v1848_v6, %v818_v19 }
 0x55f   : > { %1470 = vset.pattern.permute.xlu1 %v1646_v63  ;;  %830 = vperm.xlu0 %1471, %v820_v20  }
 0x560   : > { %823 = vperm.xlu1 %1470, %v813_v11  }
 0x56d   : > { %v997_v21 = vpop.permute.xlu1 %996 }
 0x56e   : > { %v998_v22 = vrot.slane %v997_v21, 4 }
 0x570   : > { %v1000_v24 = vmul.f32 %v998_v22, %v1942_v16  ;;  %v1001_v25 = vmul.f32 %v998_v22, %v1944_v17 }
 0x5da   : > { %v1005_v23 = vpop.permute.xlu1 %1004 }
 0x5db   : > { %v1006_v26 = vrot.slane %v1005_v23, 4 }
 0x5dd   : > { %v1008_v27 = vadd.f32 %v1006_v26, %v1000_v24  ;;  %v1009_v28 = vadd.f32 %v1006_v26, %v1001_v25 }
 0x5de   : > { %v831_v33 = vpop.permute.xlu0 %830 }
 0x5df   : > { %v824_v29 = vpop.permute.xlu1 %823  ;;  %v1013_v30 = vrot.slane %v1009_v28, 4  ;;  %v1012_v31 = vrot.slane %v1008_v27, 4 }
 0x5e0   : > { %v826_v6 = vmul.f32 %v824_v29, %v1930_v5  ;;  %v827_v32 = vmul.f32 %v824_v29, %v1932_v8 }
 0x5e1   : > { %1336 = vmatprep.subr.msk.mxu1 %vm566_vm1, %v1013_v30 }
 0x5e2   : > { %1337 = vmatpush1.msk.msra.mxu1 %vm566_vm1, %v1012_v31  ;;  %v834_v16 = vadd.f32 %v831_v33, %v827_v32  ;;  %v833_v17 = vadd.f32 %v831_v33, %v826_v6 }
 0x5e3   : > { %1338 = vmatmul.mubr.msk.f32.vlgmr.msra.gmra.mrb[0].mxu1 %vm835_vm8, %v1850_v7 }
 0x5e4   : > { %1333 = vmatprep.subr.msk.mxu0 %vm566_vm1, %v834_v16  ;;  %v1090_v34 = vsel %vm566_vm1, %v834_v16, %v1009_v28  ;;  %v1089_v35 = vsel %vm566_vm1, %v833_v17, %v1008_v27 }
 0x5e5   : > { %1092 = vst [vmem:[%s1858_s12 + $0x8] sm:$0xff] %v1090_v34  ;;  %1334 = vmatpush1.msk.msra.mxu0 %vm566_vm1, %v833_v17  ;;  %1091 = vst [vmem:[%s1858_s12] sm:$0xff] %v1089_v35 }
 0x5e6   : > { %1335 = vmatmul.mubr.msk.f32.vlgmr.msra.gmra.mrb[0].mxu0 %vm835_vm8, %v1850_v7 }
 0x6b5   : > { %1104 = sbr.rel (%p1339_p10) target bundleno = 1725 (0x6bd), region = 68 }
 0x6b6   : > { %v1084_v5 = vpop.f32.mrb[0].mxu1 }
 0x6b7   : > { %v1095_v8 = vrot.slane %v1084_v5, 4  ;;  %v1086_v36 = vpop.f32.mrb[1].mxu1 }
 0x6b8   : > { %v1096_v37 = vrot.slane %v1086_v36, 4 }
 0x6b9   : > { %v911_v38 = vpop.f32.mrb[0].mxu0 }
 0x6ba   : > { %v1099_v39 = vsel %vm566_vm1, %v911_v38, %v1095_v8  ;;  %v913_v40 = vpop.f32.mrb[1].mxu0 }
 0x6bb   : > { %v1100_v41 = vsel %vm566_vm1, %v913_v40, %v1096_v37  ;;  %1105 = vst [vmem:[#allocation9] sm:$0xff] (!%p1339_p10), %v1099_v39 }
 0x6bc   : > { %1106 = vst [vmem:[#allocation9 + $0x8] sm:$0xff] %v1100_v41 }
 0x6bd PF: > { %p1340_p3 = scmp.le.s32.totalorder %s1626_s16, 0 }
 0x6bf   : > { %1110 = sbr.rel (%p1340_p3) target bundleno = 1735 (0x6c7), region = 72 }
 0x6c3   : > { %v1111_v7 = vld [vmem:[#allocation9] sm:$0xff] (!%p1340_p3)  ;;  %v1112_v42 = vld [vmem:[#allocation9 + $0x8] sm:$0xff] (!%p1340_p3) }
 0x6c4   : > { %v1113_v43 = vadd.f32 (!%p1340_p3), %v1111_v7, %v1099_v39  ;;  %v1114_v44 = vadd.f32 (!%p1340_p3), %v1112_v42, %v1100_v41 }
 0x6c6   : > { %1115 = vst [vmem:[#allocation9] sm:$0xff] %v1113_v43  ;;  %1116 = vst [vmem:[#allocation9 + $0x8] sm:$0xff] %v1114_v44 }
 0x6c7 PF: > { %p1341_p6 = scmp.ne.s32.totalorder %s1626_s16, 10 }
 0x6c8   : > { %v1121_v45 = vld [vmem:[%s2064_s5] sm:$0xf] (!%p1341_p6)  ;;  %v1649_v46 = vmov (!%p1341_p6), 0   ;;  %v1650_v49 = vmov (!%p1341_p6), 1  }
 0x6c9   : > { %1120 = sbr.rel (%p1341_p6) target bundleno = 1877 (0x755), region = 76  ;;  %1476 = vset.pattern.permute.xlu0 (!%p1341_p6), %v1649_v46  ;;  %v1123_v47 = vrot.slane (!%p1341_p6), %v1121_v45, 4 }
 0x6cb   : > { %v1125_v48 = vsel (!%p1341_p6), %vm566_vm1, %v1121_v45, %v1123_v47 }
 0x6cc   : > { %1130 = vperm.xlu0 (!%p1341_p6), %1476, %v1125_v48  }
 0x6cd   : > { %v1126_v50 = vld [vmem:[#allocation9] sm:$0xff] (!%p1341_p6)  ;;  %v1127_v51 = vld [vmem:[#allocation9 + $0x8] sm:$0xff] (!%p1341_p6) }
 0x6d0   : > { %1477 = vset.pattern.permute.xlu0 %v1650_v49 }
 0x6d1   : > { %1138 = vperm.xlu0 %1477, %v1125_v48  }
 0x74b   : > { %v1131_v52 = vpop.permute.xlu0 %1130 }
 0x74c   : > { %v1133_v53 = vadd.f32 %v1131_v52, %v1126_v50  ;;  %v1134_v54 = vadd.f32 %v1131_v52, %v1127_v51 }
 0x74e   : > { %vm1135_vm9 = vcmp.gt.f32.partialorder %v1133_v53, 0.0  ;;  %vm1136_vm10 = vcmp.gt.f32.partialorder %v1134_v54, 0.0 }
 0x750   : > { %v1139_v55 = vpop.permute.xlu0 %1138 }
 0x751   : > { %v1141_v56 = vmul.f32 %v1139_v55, %v1133_v53  ;;  %v1142_v57 = vmul.f32 %v1139_v55, %v1134_v54 }
 0x753   : > { %v1143_v58 = vsel %vm1135_vm9, %v1133_v53, %v1141_v56  ;;  %v1144_v59 = vsel %vm1136_vm10, %v1134_v54, %v1142_v57 }
 0x754   : > { %1145 = vst [vmem:[#allocation9] sm:$0xff] %v1143_v58  ;;  %1146 = vst [vmem:[#allocation9 + $0x8] sm:$0xff] %v1144_v59 }
 0x755 PF: > { %s1350_s13 = sshll.u32 %s1626_s16, 8  ;;  %s1164_s10 = sshll.u32 %s1858_s12, 4  ;;  %s1165_s10 = int_to_ptr.vmem [resolvable:$true] %s1164_s10 }
 0x756   : > { %s1994_s30 = scalar_lea.hbm %s2067_s8, %s1350_s13  ;;  %s1148_s1 = scalar_lea.sflag [#allocation7], %s1823_s20 }
 0x757   : > { %s1520_s17 = scalar_lea.vmem %s1165_s10, 256  ;;  %p2086_p9 = scmp.ne.s32.totalorder %s2080_s27, 0 }
 0x758   : > { %p1521_p8 = scmp.ne.s32.totalorder %s1165_s10, %s1520_s17  ;;  %s1651_s22 = smov [#allocation8]  }
 0x759   : > { %s1524_s24 = sshll.u32 %s1651_s22, 4  ;;  %s1525_s24 = int_to_ptr.vmem [resolvable:$false] %s1524_s24 }
 0x75a   : > { %p1522_p12 = pnand %p1521_p8, %p2086_p9  ;;  %s1526_s11 = scalar_lea.vmem %s1525_s24, 512 }
 0x75b   : > { %p1527_p2 = scmp.lt.s32.totalorder %s1165_s10, %s1525_s24  ;;  %p1528_p5 = scmp.lt.s32.totalorder %s1526_s11, %s1520_s17 }
 0x75c   : > { %p1523_p1 = pneg %p1522_p12 }
 0x75d   : > { %p1529_p7 = por %p1528_p5, %p1527_p2 }
 0x75f   : > { %p1530_p11 = pnand %p1529_p7, %p1523_p1 }
 0x761   : > { %1533 = shalt.err (!%p1530_p11)
}
 0x762   : > { %s1534_s16 = scalar_lea.hbm %s1994_s30, 256  ;;  %s1538_s23 = scalar_lea.hbm %s2067_s8, 2816 }
 0x763   : > { %p1535_p13 = scmp.ne.s32.totalorder %s1994_s30, %s1534_s16  ;;  %p1539_p10 = scmp.lt.u32.totalorder %s1994_s30, %s2067_s8 }
 0x764   : > { %p1540_p3 = scmp.lt.u32.totalorder %s1538_s23, %s1534_s16  ;;  %p1542_p8 = scmp.lt.u32.totalorder %s1534_s16, %s1994_s30 }
 0x765   : > { %p1536_p0 = pnand %p1535_p13, %p2086_p9 }
 0x766   : > { %p1541_p6 = por %p1540_p3, %p1539_p10 }
 0x767   : > { %p1537_p4 = pneg %p1536_p0 }
 0x768   : > { %p1543_p12 = por %p1542_p8, %p1541_p6 }
 0x76a   : > { %p1544_p1 = pnand %p1543_p12, %p1537_p4 }
 0x76c   : > { %1547 = shalt.err (!%p1544_p1)
}
 0x76d   : > { %1385 = dma.vmem_to_hbm [thread:$0]  (%p2086_p9), %s1165_s10, 256, %s1994_s30, %s1148_s1  }
 0x76e   : > { %s1652_s26 = smov [#allocation9]   ;;  %p2087_p5 = scmp.ne.s32.totalorder %s2078_s25, 0 }
 0x76f   : > { %s1178_s19 = sshll.u32 %s1652_s26, 4  ;;  %s1179_s19 = int_to_ptr.vmem [resolvable:$true] %s1178_s19 }
 0x770   : > { %s1548_s17 = scalar_lea.vmem %s1179_s19, 256  ;;  %p1555_p13 = scmp.lt.s32.totalorder %s1179_s19, %s1179_s19 }
 0x771   : > { %p1549_p2 = scmp.ne.s32.totalorder %s1179_s19, %s1548_s17  ;;  %p1556_p0 = scmp.lt.s32.totalorder %s1548_s17, %s1548_s17 }
 0x773   : > { %p1550_p7 = pnand %p1549_p2, %p2087_p5  ;;  %p1557_p10 = por %p1556_p0, %p1555_p13 }
 0x775   : > { %p1551_p11 = pneg %p1550_p7 }
 0x777   : > { %p1558_p3 = pnand %p1557_p10, %p1551_p11 }
 0x779   : > { %1561 = shalt.err (!%p1558_p3)
}
 0x77a   : > { %s1562_s27 = scalar_lea.hbm %s2068_s9, 256 }
 0x77b   : > { %p1563_p9 = scmp.ne.s32.totalorder %s2068_s9, %s1562_s27  ;;  %p1568_p8 = scmp.lt.u32.totalorder %s1562_s27, %s2068_s9 }
 0x77d   : > { %p1564_p4 = pnand %p1563_p9, %p2087_p5 }
 0x77f   : > { %p1565_p6 = pneg %p1564_p4 }
 0x781   : > { %p1570_p12 = pnand %p1568_p8, %p1565_p6 }
 0x783   : > { %1573 = shalt.err (!%p1570_p12)
}
 0x784   : > { %1387 = dma.vmem_to_hbm [thread:$0]  (%p2087_p5), %s1179_s19, 256, %s2068_s9, [#allocation10]  }
 0x785   : > { %1605 = dma.done.wait (%p2087_p5), [#allocation10], 256  }
 0x786   : > { %1607 = vsyncadd (%p2087_p5), [#allocation10], 4294967040 }
 0x787 PF: > { %p1402_p1 = scmp.ge.s32.totalorder %s1634_s18, 2  ;;  %s1194_s12 = sand.u32 1, %s1614_s14  }
 0x788   : > { %p2088_p2 = scmp.ne.s32.totalorder %s2081_s29, 0  ;;  %s1195_s23 = scalar_lea.sflag [#allocation7], %s1194_s12 }
 0x78a   : > { %p1396_p7 = pnand %p1402_p1, %p2088_p2 }
 0x78c   : > { %1609 = dma.done.wait (!%p1396_p7), %s1195_s23, 256  }
 0x78d   : > { %1611 = vsyncadd (!%p1396_p7), %s1195_s23, 4294967040  ;;  %s33_s18 = sadd.s32 1, %s1634_s18   ;;  %s2089_s16 = sld [smem:[#allocation15_spill]] }
 0x78e   : > { %p30_p11 = scmp.ge.s32.totalorder %s33_s18, 13   ;;  %s2090_s17 = sld [smem:[#allocation16_spill]] }
 0x78f   : > { %s2091_s14 = smov %s1618_s0  ;;  %s2092_s0 = smov %s1622_s15 }
 0x790   : > { %s2093_s15 = smov %s1768_s28  ;;  %32 = sbr.rel (!%p30_p11) target bundleno = 22 (0x16), region = 136 }
 0x797   :  { %1200 = vsyncpa [#allocation6], 1 }
 0x798   :  { %1202 = vsyncpa [#allocation6 + $0x1], 1 }
 0x799   :  { %1203 = vsyncpa [#allocation7], 1 }
 0x79a   :  { %1205 = vsyncpa [#allocation7 + $0x1], 1 }
 0x79b   :  { %1206 = vsyncpa [#allocation10], 1 }

</bundles_post_ra>
